<compile_context>
chip_gen: v7x
topology: tpu7x:2x2x1
jax: 0.10.0
libtpu: 0.0.40
codegen_flags: <defaults>
</compile_context>

<pallas_src>
import jax
import jax.numpy as jnp
from jax.experimental import pallas as pl
from jax.experimental.pallas import tpu as pltpu

# Logical sizes from the PyTorch module: Linear(2, 8), ReLU, Linear(8, 1)
IN_F, HID_F, OUT_F = 2, 8, 1

PAD_HID = 128        # hidden lane width (VMEM/vreg intermediate only)
PAD_OUT = 8          # narrow output lane width (was 128)
BIAS_LANE = HID_F    # hidden lane that carries a constant 1 into layer 2 (folds b2)
MAX_TILE_B = 4096    # large batch tiles amortize the ~0.35 us/grid-step overhead


def mlp_kernel(x_ref, w1_ref, b1_ref, w2_ref, o_ref):
    # x_ref : (tile_b, 2)   natural, unpadded feature lanes
    # w1_ref: (2, 128)      W1 in lanes 0..7
    # b1_ref: (1, 128)      b1 in lanes 0..7, 1.0 in lane BIAS_LANE
    # w2_ref: (128, 8)      W2 in rows 0..7 / col 0, b2 in row BIAS_LANE / col 0
    h = jnp.dot(x_ref[...], w1_ref[...], preferred_element_type=jnp.float32)
    h = h + b1_ref[...]                 # VPU broadcast-add; sets h[:, BIAS_LANE] = 1
    # NOTE: folding b2 via the constant-1 hidden lane requires the activation to
    # satisfy f(1) == 1. ReLU does; revisit if the activation ever changes.
    h = jnp.maximum(h, 0.0)             # ReLU; relu(1) == 1 keeps the bias lane alive
    y = jnp.dot(h, w2_ref[...], preferred_element_type=jnp.float32)
    o_ref[...] = y.astype(o_ref.dtype)  # narrow (tile_b, 8) store


def prepare_params(w1, b1, w2, b2):
    """Pad/fuse parameters ONCE into three small resident tensors."""
    w1p = jnp.zeros((IN_F, PAD_HID), jnp.float32).at[:, :HID_F].set(w1)

    b1p = jnp.zeros((1, PAD_HID), jnp.float32)
    b1p = b1p.at[0, :HID_F].set(b1)
    b1p = b1p.at[0, BIAS_LANE].set(1.0)            # makes h[:, BIAS_LANE] == 1

    w2p = jnp.zeros((PAD_HID, PAD_OUT), jnp.float32)
    w2p = w2p.at[:HID_F, :OUT_F].set(w2)
    w2p = w2p.at[BIAS_LANE, :OUT_F].set(b2)        # constant-1 hidden lane -> adds b2
    return w1p, b1p, w2p


def _round_up(n, m):
    return ((n + m - 1) // m) * m


@jax.jit
def mlp_forward(x, w1p, b1p, w2p):
    """x: (B, 2) f32 -> (B, 1) f32 (== Net.forward)."""
    B = x.shape[0]
    # >=2 grid steps when there's enough work so both v7x TensorCores get a tile.
    n_min = 2 if B > 8 else 1
    tile_b = min(MAX_TILE_B, _round_up(-(-B // n_min), 8))
    b_pad = _round_up(B, tile_b)

    x = x.astype(jnp.float32)
    # Only row-pad (8 B/row) when B isn't a tile multiple; padded rows are sliced off.
    xp = x if b_pad == B else jnp.zeros((b_pad, IN_F), jnp.float32).at[:B].set(x)

    out_padded = pl.pallas_call(
        mlp_kernel,
        out_shape=jax.ShapeDtypeStruct((b_pad, PAD_OUT), jnp.float32),
        grid=(b_pad // tile_b,),
        in_specs=[
            pl.BlockSpec((tile_b, IN_F), lambda i: (i, 0)),       # streamed x tiles
            pl.BlockSpec((IN_F, PAD_HID), lambda i: (0, 0)),      # resident W1
            pl.BlockSpec((1, PAD_HID), lambda i: (0, 0)),         # resident b1 row
            pl.BlockSpec((PAD_HID, PAD_OUT), lambda i: (0, 0)),   # resident W2(+b2)
        ],
        out_specs=pl.BlockSpec((tile_b, PAD_OUT), lambda i: (i, 0)),
        compiler_params=pltpu.CompilerParams(
            dimension_semantics=("parallel",)),   # batch tiles split across TCs on v7x
    )(xp, w1p, b1p, w2p)

    return out_padded[:B, :OUT_F]


def init_params(key):
    """Deterministic init mimicking nn.Linear's U(-1/sqrt(fan_in), 1/sqrt(fan_in))."""
    k1, k2, k3, k4 = jax.random.split(key, 4)
    lim1 = 1.0 / jnp.sqrt(float(IN_F))
    lim2 = 1.0 / jnp.sqrt(float(HID_F))
    w1 = jax.random.uniform(k1, (IN_F, HID_F), jnp.float32, -lim1, lim1)
    b1 = jax.random.uniform(k2, (HID_F,), jnp.float32, -lim1, lim1)
    w2 = jax.random.uniform(k3, (HID_F, OUT_F), jnp.float32, -lim2, lim2)
    b2 = jax.random.uniform(k4, (OUT_F,), jnp.float32, -lim2, lim2)
    return w1, b1, w2, b2


if __name__ == "__main__":
    key = jax.random.PRNGKey(0)
    k_x, k_x2, k_p = jax.random.split(key, 3)

    w1, b1, w2, b2 = init_params(k_p)
    params = prepare_params(w1, b1, w2, b2)   # padded/fused once, reused every call

    def ref_fn(x):
        return jnp.maximum(x @ w1 + b1, 0.0) @ w2 + b2

    # Small batch (single grid step).
    B = 4
    x = jax.random.normal(k_x, (B, IN_F), jnp.float32)
    out = mlp_forward(x, *params)
    jax.block_until_ready(out)
    assert out.shape == (B, OUT_F)
    assert jnp.allclose(out, ref_fn(x), atol=1e-5, rtol=1e-5)

    # Larger batch exercises the multi-tile grid + row-padding path.
    B2 = 1000
    x2 = jax.random.normal(k_x2, (B2, IN_F), jnp.float32)
    out2 = mlp_forward(x2, *params)
    jax.block_until_ready(out2)
    assert out2.shape == (B2, OUT_F)
    assert jnp.allclose(out2, ref_fn(x2), atol=1e-5, rtol=1e-5)

    print("KERNEL_OK")
</pallas_src>

<mosaic_0001>
module attributes {stable_mosaic.version = 11 : i64} {
  func.func @mlp_kernel(%arg0: i32, %arg1: memref<8x2xf32, #tpu.memory_space<vmem>>, %arg2: memref<2x128xf32, #tpu.memory_space<vmem>>, %arg3: memref<1x128xf32, #tpu.memory_space<vmem>>, %arg4: memref<128x8xf32, #tpu.memory_space<vmem>>, %arg5: memref<8x8xf32, #tpu.memory_space<vmem>>) attributes {dimension_semantics = [#tpu.dimension_semantics<parallel>], iteration_bounds = array<i64: 1>, scalar_prefetch = 0 : i64, scratch_operands = 0 : i64, tpu.core_type = #tpu.core_type<tc>, window_params = [{transform_indices = @transform_0, window_bounds = array<i64: 8, 2>}, {pipeline_mode = #tpu.pipeline_mode<synchronous>, transform_indices = @transform_1, window_bounds = array<i64: 2, 128>}, {pipeline_mode = #tpu.pipeline_mode<synchronous>, transform_indices = @transform_2, window_bounds = array<i64: 1, 128>}, {pipeline_mode = #tpu.pipeline_mode<synchronous>, transform_indices = @transform_3, window_bounds = array<i64: 128, 8>}, {transform_indices = @transform_4, window_bounds = array<i64: 8, 8>}]} {
    %c0 = arith.constant 0 : index
    %c0_0 = arith.constant 0 : index
    %0 = vector.load %arg1[%c0, %c0_0] : memref<8x2xf32, #tpu.memory_space<vmem>>, vector<8x2xf32>
    %c0_1 = arith.constant 0 : index
    %c0_2 = arith.constant 0 : index
    %1 = vector.load %arg2[%c0_1, %c0_2] : memref<2x128xf32, #tpu.memory_space<vmem>>, vector<2x128xf32>
    %cst = arith.constant dense<0.000000e+00> : vector<8x128xf32>
    %2 = tpu.matmul %0, %1, %cst {dimension_numbers = #tpu.dot_dimension_numbers<[1], [0], [0], [1], [0, 0, 1, 1], [], []>} : vector<8x2xf32>, vector<2x128xf32>, vector<8x128xf32> -> vector<8x128xf32>
    %c0_3 = arith.constant 0 : index
    %c0_4 = arith.constant 0 : index
    %3 = vector.load %arg3[%c0_3, %c0_4] : memref<1x128xf32, #tpu.memory_space<vmem>>, vector<1x128xf32>
    %4 = vector.broadcast %3 : vector<1x128xf32> to vector<8x128xf32>
    %5 = arith.addf %2, %4 : vector<8x128xf32>
    %cst_5 = arith.constant 0.000000e+00 : f32
    %6 = vector.broadcast %cst_5 : f32 to vector<8x128xf32>
    %7 = arith.maximumf %5, %6 : vector<8x128xf32>
    %c0_6 = arith.constant 0 : index
    %c0_7 = arith.constant 0 : index
    %8 = vector.load %arg4[%c0_6, %c0_7] : memref<128x8xf32, #tpu.memory_space<vmem>>, vector<128x8xf32>
    %cst_8 = arith.constant dense<0.000000e+00> : vector<8x8xf32>
    %9 = tpu.matmul %7, %8, %cst_8 {dimension_numbers = #tpu.dot_dimension_numbers<[1], [0], [0], [1], [0, 0, 1, 1], [], []>} : vector<8x128xf32>, vector<128x8xf32>, vector<8x8xf32> -> vector<8x8xf32>
    %c0_9 = arith.constant 0 : index
    %c0_10 = arith.constant 0 : index
    %10 = vector.load %arg5[%c0_9, %c0_10] : memref<8x8xf32, #tpu.memory_space<vmem>>, vector<8x8xf32>
    tpu.vector_store %arg5[%c0_9, %c0_10], %9 {strides = array<i32>} : memref<8x8xf32, #tpu.memory_space<vmem>>, vector<8x8xf32>,
    return
  }
  func.func @transform_0(%arg0: i32) -> (i32, i32) {
    %c0_i32 = arith.constant 0 : i32
    %c0_i32_0 = arith.constant 0 : i32
    return %arg0, %c0_i32 : i32, i32
  }
  func.func @transform_1(%arg0: i32) -> (i32, i32) {
    %c0_i32 = arith.constant 0 : i32
    %c0_i32_0 = arith.constant 0 : i32
    %c0_i32_1 = arith.constant 0 : i32
    return %c0_i32, %c0_i32_0 : i32, i32
  }
  func.func @transform_2(%arg0: i32) -> (i32, i32) {
    %c0_i32 = arith.constant 0 : i32
    %c0_i32_0 = arith.constant 0 : i32
    %c0_i32_1 = arith.constant 0 : i32
    return %c0_i32, %c0_i32_0 : i32, i32
  }
  func.func @transform_3(%arg0: i32) -> (i32, i32) {
    %c0_i32 = arith.constant 0 : i32
    %c0_i32_0 = arith.constant 0 : i32
    %c0_i32_1 = arith.constant 0 : i32
    return %c0_i32, %c0_i32_0 : i32, i32
  }
  func.func @transform_4(%arg0: i32) -> (i32, i32) {
    %c0_i32 = arith.constant 0 : i32
    %c0_i32_0 = arith.constant 0 : i32
    return %arg0, %c0_i32 : i32, i32
  }
}

</mosaic_0001>

<bundles_post_ra>
// kernel: mlp_forward.1
= control target key start
LH: loop header
LB: loop body
LE: loop exit
PB: predicated region body
PF: predicated region fallthrough
CT: control target
= control target key end

     0   :  { %vm30_vm0 = vcmask 1041408   ;;  %vm26_vm1 = vcmask 15360   ;;  %v286_v0 = vmov 0.0   ;;  %vm287_vm2 = vmmov 0   ;;  %s374_s1 = inlined_call_operand.vmem [shape: f32[2,128], index: 1, kind: input, shape index: {}]   ;;  %s375_s0 = inlined_call_operand.vmem [shape: f32[8,2], index: 0, kind: input, shape index: {}]   ;;  %s376_s3 = inlined_call_operand.vmem [shape: f32[128,8], index: 3, kind: input, shape index: {}]   ;;  %s377_s2 = inlined_call_operand.vmem [shape: f32[1,128], index: 2, kind: input, shape index: {}]   ;;  %s378_s4 = inlined_call_operand.vmem [shape: f32[8,8], index: 4, kind: output, shape index: {}]  }
   0x1   :  { %219 = vmatprep.subr.mxu0 %v286_v0  ;;  %v18_v1 = vld [vmem:[%s374_s1] sm:$0x3]  ;;  %221 = vmatprep.mubr.msk.f32.mxu0 %vm287_vm2, %v286_v0  ;;  %v288_v4 = vmov 0.0|0.0   ;;  %v106_v5 = vld [vmem:[%s376_s3 + $0x8] sm:$0xff]  ;;  %v107_v6 = vld [vmem:[%s376_s3 + $0x10] sm:$0xff]  ;;  %vm191_vm3 = vcmask 64512  }
   0x2   :  { %v17_v2 = vld [vmem:[%s375_s0] sm:$0xff]  ;;  %220 = vmatpush3.msk.msra.mxu0 %vm30_vm0, %v18_v1  ;;  %259 = vmatprep.subr.bf16.mxu1 %v288_v4  ;;  %v108_v7 = vld [vmem:[%s376_s3 + $0x18] sm:$0xff]  ;;  %v110_v11 = vld [vmem:[%s376_s3 + $0x28] sm:$0xff] }
   0x3   :  { %v105_v3 = vld [vmem:[%s376_s3] sm:$0xff]  ;;  %222 = vmatmul.mubr.msk.f32.vlgmr.msra.gmra.mrb[0].mxu0 %vm26_vm1, %v17_v2  ;;  %256 = vmatprep.mubr.msk.f32.mxu1 %vm287_vm2, %v286_v0  ;;  %v263_v9 = vpack.c.bf16 %v108_v7, %v107_v6  ;;  %v111_v13 = vld [vmem:[%s376_s3 + $0x30] sm:$0xff]  ;;  %v112_v14 = vld [vmem:[%s376_s3 + $0x38] sm:$0xff] }
   0x4   :  { %v260_v8 = vpack.c.bf16 %v106_v5, %v105_v3  ;;  %v109_v10 = vld [vmem:[%s376_s3 + $0x20] sm:$0xff]  ;;  %v269_v15 = vpack.c.bf16 %v112_v14, %v111_v13  ;;  %v114_v17 = vld [vmem:[%s376_s3 + $0x48] sm:$0xff]  ;;  %v115_v19 = vld [vmem:[%s376_s3 + $0x50] sm:$0xff] }
   0x5   :  { %v266_v12 = vpack.c.bf16 %v110_v11, %v109_v10  ;;  %v113_v16 = vld [vmem:[%s376_s3 + $0x40] sm:$0xff]  ;;  %v116_v20 = vld [vmem:[%s376_s3 + $0x58] sm:$0xff]  ;;  %v118_v23 = vld [vmem:[%s376_s3 + $0x68] sm:$0xff] }
   0x6   :  { %261 = vmatpush3.bf16.msra.mxu1 %v260_v8  ;;  %v272_v18 = vpack.c.bf16 %v114_v17, %v113_v16  ;;  %v275_v21 = vpack.c.bf16 %v116_v20, %v115_v19  ;;  %v117_v22 = vld [vmem:[%s376_s3 + $0x60] sm:$0xff]  ;;  %v119_v25 = vld [vmem:[%s376_s3 + $0x70] sm:$0xff]  ;;  %v120_v26 = vld [vmem:[%s376_s3 + $0x78] sm:$0xff] }
   0x7   :  { %262 = vmatprep.subr.bf16.mxu1 %v288_v4  ;;  %v278_v24 = vpack.c.bf16 %v118_v23, %v117_v22  ;;  %v281_v27 = vpack.c.bf16 %v120_v26, %v119_v25  ;;  %v197_v28 = vld [vmem:[%s377_s2] ss:$0 sm:$0xff] }
   0xa   :  { %264 = vmatpush3.bf16.msra.mxu1 %v263_v9 }
   0xb   :  { %265 = vmatprep.subr.bf16.mxu1 %v288_v4 }
   0xe   :  { %267 = vmatpush3.bf16.msra.mxu1 %v266_v12 }
   0xf   :  { %268 = vmatprep.subr.bf16.mxu1 %v288_v4 }
  0x12   :  { %270 = vmatpush3.bf16.msra.mxu1 %v269_v15 }
  0x13   :  { %271 = vmatprep.subr.bf16.mxu1 %v288_v4 }
  0x16   :  { %273 = vmatpush3.bf16.msra.mxu1 %v272_v18 }
  0x17   :  { %274 = vmatprep.subr.bf16.mxu1 %v288_v4 }
  0x1a   :  { %276 = vmatpush3.bf16.msra.mxu1 %v275_v21 }
  0x1b   :  { %277 = vmatprep.subr.bf16.mxu1 %v288_v4 }
  0x1e   :  { %279 = vmatpush3.bf16.msra.mxu1 %v278_v24 }
  0x1f   :  { %280 = vmatprep.subr.bf16.mxu1 %v288_v4 }
  0x22   :  { %282 = vmatpush3.bf16.msra.mxu1 %v281_v27 }
  0xd6   :  { %v100_v29 = vpop.f32.mrb[0].mxu0 }
  0xd7   :  { %v101_v30 = vadd.f32 %v197_v28, %v100_v29  ;;  %v223_v31 = vpop.f32.mrb[1].mxu0 }
  0xd9   :  { %v104_v32 = vmax.f32 %v101_v30, 0.0 }
  0xdb   :  { %257 = vmatmul.mubr.f32.vlgmr.msra.gmra.mrb[0].mxu1 %v104_v32 }
 0x1ae   :  { %v187_v33 = vpop.f32.mrb[0].mxu1 }
 0x1af   :  { %192 = vst.msk [vmem:[%s378_s4] sm:$0xff] %vm191_vm3, %v187_v33  ;;  %v258_v34 = vpop.f32.mrb[1].mxu1 }

</bundles_post_ra>
